<compile_context>
chip_gen: v7x
topology: tpu7x:2x2x1
jax: 0.10.0
libtpu: 0.0.40
codegen_flags: <defaults>
</compile_context>

<pallas_src>
import functools

import jax
import jax.numpy as jnp
from jax.experimental import pallas as pl
from jax.experimental.pallas import tpu as pltpu

LANE = 128        # TPU lane width; hidden/output widths are zero-padded to this.
NEG_BIG = -1e30   # pad value for unused logit lanes -> exp() underflows to exactly 0.


def mlp_kernel(x_ref, w1_ref, w2_ref, w3_ref, b_ref, o_ref):
    """Fused 3-layer MLP + softmax on one batch tile (all widths padded to 128)."""
    x = x_ref[...]                     # (bt, D0)
    b1 = b_ref[0:1, :]                 # (1, 128)  real bias then zeros
    b2 = b_ref[1:2, :]                 # (1, 128)  real bias then zeros
    b3 = b_ref[2:3, :]                 # (1, 128)  real bias then -1e30

    # layer 1: Linear + ReLU (padded lanes stay exactly 0)
    h = jnp.dot(x, w1_ref[...], preferred_element_type=jnp.float32) + b1
    h = jnp.maximum(h, 0.0)

    # layer 2: Linear + ReLU (padded lanes stay exactly 0)
    h = jnp.dot(h, w2_ref[...], preferred_element_type=jnp.float32) + b2
    h = jnp.maximum(h, 0.0)

    # layer 3: Linear; padded logit lanes are -1e30 -> contribute 0 to softmax
    logits = jnp.dot(h, w3_ref[...], preferred_element_type=jnp.float32) + b3

    # numerically-stable softmax over the 128-lane (padded) logits
    m = jnp.max(logits, axis=-1, keepdims=True)
    e = jnp.exp(logits - m)                          # padded lanes underflow to 0
    denom = jnp.sum(e, axis=-1, keepdims=True)
    o_ref[...] = (e * pl.reciprocal(denom, approx=True)).astype(o_ref.dtype)


@functools.partial(jax.jit, static_argnames=("batch_tile",))
def mlp_forward(x, params, batch_tile=256):
    """x: (B, D0) float32. params: dict of transposed weights (in,out) and (1,out) biases."""
    B, D0 = x.shape
    w1, b1 = params["w1"], params["b1"]   # (D0, D1), (1, D1)
    w2, b2 = params["w2"], params["b2"]   # (D1, D2), (1, D2)
    w3, b3 = params["w3"], params["b3"]   # (D2, D3), (1, D3)
    D1, D2, D3 = w1.shape[1], w2.shape[1], w3.shape[1]
    assert max(D1, D2, D3) <= LANE, "this packing assumes layer widths <= 128"
    assert batch_tile % 8 == 0, "batch_tile must be a multiple of 8 (f32 sublane)"

    # --- lane-pad parameters once per call (tiny, fused by XLA) ---------------
    w1p = jnp.pad(w1, ((0, 0), (0, LANE - D1)))                    # (D0, 128)
    w2p = jnp.pad(w2, ((0, LANE - D1), (0, LANE - D2)))            # (128, 128)
    w3p = jnp.pad(w3, ((0, LANE - D2), (0, LANE - D3)))            # (128, 128)
    b_pack = jnp.concatenate(
        [jnp.pad(b1, ((0, 0), (0, LANE - D1))),
         jnp.pad(b2, ((0, 0), (0, LANE - D2))),
         jnp.pad(b3, ((0, 0), (0, LANE - D3)), constant_values=NEG_BIG),
         jnp.zeros((5, LANE), jnp.float32)],
        axis=0)                                                     # (8, 128)

    # --- pad batch to a multiple of the tile (partial tiles handled here) -----
    n_tiles = pl.cdiv(B, batch_tile)
    B_pad = n_tiles * batch_tile
    x_pad = jnp.pad(x, ((0, B_pad - B), (0, 0)))

    # TODO(synk): on v6e/v7x the operands could be cast to bf16 (f32 accumulation
    # kept via preferred_element_type); left in f32 for cross-generation accuracy.
    out = pl.pallas_call(
        mlp_kernel,
        out_shape=jax.ShapeDtypeStruct((B_pad, LANE), jnp.float32),
        grid=(n_tiles,),
        in_specs=[
            pl.BlockSpec((batch_tile, D0), lambda i: (i, 0)),   # x tile
            pl.BlockSpec((D0, LANE), lambda i: (0, 0)),         # w1 (resident)
            pl.BlockSpec((LANE, LANE), lambda i: (0, 0)),       # w2 (resident)
            pl.BlockSpec((LANE, LANE), lambda i: (0, 0)),       # w3 (resident)
            pl.BlockSpec((8, LANE), lambda i: (0, 0)),          # packed biases
        ],
        out_specs=pl.BlockSpec((batch_tile, LANE), lambda i: (i, 0)),
        compiler_params=pltpu.CompilerParams(
            dimension_semantics=("parallel",)),
    )(x_pad, w1p, w2p, w3p, b_pack)

    return out[:B, :D3]


def init_params(key, dims):
    """PyTorch nn.Linear default init: U(-1/sqrt(fan_in), 1/sqrt(fan_in)).
    Weights stored pre-transposed as (in, out); biases as (1, out)."""
    params = {}
    for l in range(len(dims) - 1):
        fan_in, fan_out = dims[l], dims[l + 1]
        key, kw, kb = jax.random.split(key, 3)
        bound = 1.0 / jnp.sqrt(float(fan_in))
        w_pt = jax.random.uniform(kw, (fan_out, fan_in), jnp.float32, -bound, bound)
        b_pt = jax.random.uniform(kb, (fan_out,), jnp.float32, -bound, bound)
        params[f"w{l + 1}"] = w_pt.T                      # (in, out)
        params[f"b{l + 1}"] = b_pt.reshape(1, fan_out)    # (1, out)
    return params


def mlp_reference(x, params):
    """Plain-JAX reference of the same forward pass."""
    h = jnp.maximum(x @ params["w1"] + params["b1"], 0.0)
    h = jnp.maximum(h @ params["w2"] + params["b2"], 0.0)
    logits = h @ params["w3"] + params["b3"]
    return jax.nn.softmax(logits, axis=-1)


if __name__ == "__main__":
    dims = [16, 32, 32, 4]          # dim_per_layer
    batch = 1000                    # deliberately NOT a multiple of the tile

    key = jax.random.PRNGKey(0)
    key, kx = jax.random.split(key)
    x = jax.random.normal(kx, (batch, dims[0]), jnp.float32)
    params = init_params(key, dims)

    out = mlp_forward(x, params, batch_tile=256)   # grid = (4,), all parallel
    out = jax.block_until_ready(out)

    ref = mlp_reference(x, params)
    assert out.shape == (batch, dims[-1])
    # tolerance relaxed slightly for the approx (EUP) reciprocal in the softmax
    assert jnp.allclose(out, ref, atol=1e-3, rtol=1e-3), float(jnp.max(jnp.abs(out - ref)))
    assert jnp.allclose(jnp.sum(out, axis=-1), jnp.ones((batch,)), atol=1e-3)

    print("KERNEL_OK")
</pallas_src>

<mosaic_0001>
module attributes {stable_mosaic.version = 11 : i64} {
  func.func @mlp_kernel(%arg0: i32, %arg1: memref<256x16xf32, #tpu.memory_space<vmem>>, %arg2: memref<16x128xf32, #tpu.memory_space<vmem>>, %arg3: memref<128x128xf32, #tpu.memory_space<vmem>>, %arg4: memref<128x128xf32, #tpu.memory_space<vmem>>, %arg5: memref<8x128xf32, #tpu.memory_space<vmem>>, %arg6: memref<256x128xf32, #tpu.memory_space<vmem>>) attributes {dimension_semantics = [#tpu.dimension_semantics<parallel>], iteration_bounds = array<i64: 4>, scalar_prefetch = 0 : i64, scratch_operands = 0 : i64, tpu.core_type = #tpu.core_type<tc>, window_params = [{transform_indices = @transform_0, window_bounds = array<i64: 256, 16>}, {pipeline_mode = #tpu.pipeline_mode<synchronous>, transform_indices = @transform_1, window_bounds = array<i64: 16, 128>}, {pipeline_mode = #tpu.pipeline_mode<synchronous>, transform_indices = @transform_2, window_bounds = array<i64: 128, 128>}, {pipeline_mode = #tpu.pipeline_mode<synchronous>, transform_indices = @transform_3, window_bounds = array<i64: 128, 128>}, {pipeline_mode = #tpu.pipeline_mode<synchronous>, transform_indices = @transform_4, window_bounds = array<i64: 8, 128>}, {transform_indices = @transform_5, window_bounds = array<i64: 256, 128>}]} {
    %c0 = arith.constant 0 : index
    %c0_0 = arith.constant 0 : index
    %0 = vector.load %arg1[%c0, %c0_0] : memref<256x16xf32, #tpu.memory_space<vmem>>, vector<256x16xf32>
    %c0_1 = arith.constant 0 : index
    %c0_2 = arith.constant 0 : index
    %1 = vector.load %arg5[%c0_1, %c0_2] : memref<8x128xf32, #tpu.memory_space<vmem>>, vector<1x128xf32>
    %c1 = arith.constant 1 : index
    %c0_3 = arith.constant 0 : index
    %2 = vector.load %arg5[%c1, %c0_3] : memref<8x128xf32, #tpu.memory_space<vmem>>, vector<1x128xf32>
    %c2 = arith.constant 2 : index
    %c0_4 = arith.constant 0 : index
    %3 = vector.load %arg5[%c2, %c0_4] : memref<8x128xf32, #tpu.memory_space<vmem>>, vector<1x128xf32>
    %c0_5 = arith.constant 0 : index
    %c0_6 = arith.constant 0 : index
    %4 = vector.load %arg2[%c0_5, %c0_6] : memref<16x128xf32, #tpu.memory_space<vmem>>, vector<16x128xf32>
    %cst = arith.constant dense<0.000000e+00> : vector<256x128xf32>
    %5 = tpu.matmul %0, %4, %cst {dimension_numbers = #tpu.dot_dimension_numbers<[1], [0], [0], [1], [0, 0, 1, 1], [], []>} : vector<256x16xf32>, vector<16x128xf32>, vector<256x128xf32> -> vector<256x128xf32>
    %6 = vector.broadcast %1 : vector<1x128xf32> to vector<256x128xf32>
    %7 = arith.addf %5, %6 : vector<256x128xf32>
    %cst_7 = arith.constant 0.000000e+00 : f32
    %8 = vector.broadcast %cst_7 : f32 to vector<256x128xf32>
    %9 = arith.maximumf %7, %8 : vector<256x128xf32>
    %c0_8 = arith.constant 0 : index
    %c0_9 = arith.constant 0 : index
    %10 = vector.load %arg3[%c0_8, %c0_9] : memref<128x128xf32, #tpu.memory_space<vmem>>, vector<128x128xf32>
    %cst_10 = arith.constant dense<0.000000e+00> : vector<256x128xf32>
    %11 = tpu.matmul %9, %10, %cst_10 {dimension_numbers = #tpu.dot_dimension_numbers<[1], [0], [0], [1], [0, 0, 1, 1], [], []>} : vector<256x128xf32>, vector<128x128xf32>, vector<256x128xf32> -> vector<256x128xf32>
    %12 = vector.broadcast %2 : vector<1x128xf32> to vector<256x128xf32>
    %13 = arith.addf %11, %12 : vector<256x128xf32>
    %cst_11 = arith.constant 0.000000e+00 : f32
    %14 = vector.broadcast %cst_11 : f32 to vector<256x128xf32>
    %15 = arith.maximumf %13, %14 : vector<256x128xf32>
    %c0_12 = arith.constant 0 : index
    %c0_13 = arith.constant 0 : index
    %16 = vector.load %arg4[%c0_12, %c0_13] : memref<128x128xf32, #tpu.memory_space<vmem>>, vector<128x128xf32>
    %cst_14 = arith.constant dense<0.000000e+00> : vector<256x128xf32>
    %17 = tpu.matmul %15, %16, %cst_14 {dimension_numbers = #tpu.dot_dimension_numbers<[1], [0], [0], [1], [0, 0, 1, 1], [], []>} : vector<256x128xf32>, vector<128x128xf32>, vector<256x128xf32> -> vector<256x128xf32>
    %18 = vector.broadcast %3 : vector<1x128xf32> to vector<256x128xf32>
    %19 = arith.addf %17, %18 : vector<256x128xf32>
    %cst_15 = arith.constant dense<0xFF800000> : vector<256xf32>
    %20 = vector.multi_reduction <maximumf>, %19, %cst_15 [1] : vector<256x128xf32> to vector<256xf32>
    %21 = vector.shape_cast %20 : vector<256xf32> to vector<256x1xf32>
    %22 = vector.broadcast %21 : vector<256x1xf32> to vector<256x128xf32>
    %23 = arith.subf %19, %22 : vector<256x128xf32>
    %24 = math.exp %23 : vector<256x128xf32>
    %cst_16 = arith.constant dense<0.000000e+00> : vector<256xf32>
    %25 = vector.multi_reduction <add>, %24, %cst_16 [1] : vector<256x128xf32> to vector<256xf32>
    %26 = vector.shape_cast %25 : vector<256xf32> to vector<256x1xf32>
    %27 = tpu.reciprocal %26 {approx = true} : vector<256x1xf32> -> vector<256x1xf32>
    %28 = vector.broadcast %27 : vector<256x1xf32> to vector<256x128xf32>
    %29 = arith.mulf %24, %28 : vector<256x128xf32>
    %c0_17 = arith.constant 0 : index
    %c0_18 = arith.constant 0 : index
    %30 = vector.load %arg6[%c0_17, %c0_18] : memref<256x128xf32, #tpu.memory_space<vmem>>, vector<256x128xf32>
    tpu.vector_store %arg6[%c0_17, %c0_18], %29 {strides = array<i32>} : memref<256x128xf32, #tpu.memory_space<vmem>>, vector<256x128xf32>,
    return
  }
  func.func @transform_0(%arg0: i32) -> (i32, i32) {
    %c0_i32 = arith.constant 0 : i32
    %c0_i32_0 = arith.constant 0 : i32
    return %arg0, %c0_i32 : i32, i32
  }
  func.func @transform_1(%arg0: i32) -> (i32, i32) {
    %c0_i32 = arith.constant 0 : i32
    %c0_i32_0 = arith.constant 0 : i32
    %c0_i32_1 = arith.constant 0 : i32
    return %c0_i32, %c0_i32_0 : i32, i32
  }
  func.func @transform_2(%arg0: i32) -> (i32, i32) {
    %c0_i32 = arith.constant 0 : i32
    %c0_i32_0 = arith.constant 0 : i32
    %c0_i32_1 = arith.constant 0 : i32
    return %c0_i32, %c0_i32_0 : i32, i32
  }
  func.func @transform_3(%arg0: i32) -> (i32, i32) {
    %c0_i32 = arith.constant 0 : i32
    %c0_i32_0 = arith.constant 0 : i32
    %c0_i32_1 = arith.constant 0 : i32
    return %c0_i32, %c0_i32_0 : i32, i32
  }
  func.func @transform_4(%arg0: i32) -> (i32, i32) {
    %c0_i32 = arith.constant 0 : i32
    %c0_i32_0 = arith.constant 0 : i32
    %c0_i32_1 = arith.constant 0 : i32
    return %c0_i32, %c0_i32_0 : i32, i32
  }
  func.func @transform_5(%arg0: i32) -> (i32, i32) {
    %c0_i32 = arith.constant 0 : i32
    %c0_i32_0 = arith.constant 0 : i32
    return %arg0, %c0_i32 : i32, i32
  }
}

</mosaic_0001>

<bundles_post_ra>
// kernel: mlp_forward.1
= control target key start
LH: loop header
LB: loop body
LE: loop exit
PB: predicated region body
PF: predicated region fallthrough
CT: control target
= control target key end

     0   :  { %s2153_s18 = smov 0   ;;  %s2752_s0 = inlined_call_operand.vmem [shape: f32[1024,16], index: 0, kind: input, shape index: {}]   ;;  %s2753_s1 = inlined_call_operand.vmem [shape: f32[16,128], index: 1, kind: input, shape index: {}]   ;;  %s2754_s2 = inlined_call_operand.vmem [shape: f32[128,128], index: 2, kind: input, shape index: {}]   ;;  %s2755_s3 = inlined_call_operand.vmem [shape: f32[128,128], index: 3, kind: input, shape index: {}]   ;;  %s2756_s4 = inlined_call_operand.vmem [shape: f32[8,128], index: 4, kind: input, shape index: {}]   ;;  %s2757_s5 = inlined_call_operand.vmem [shape: f32[1024,128], index: 5, kind: output, shape index: {}]  }
   0x1 LB: > { %s1521_s19 = sadd.s32 4294967295, %s2121_s18   ;;  %p1525_p0 = scmp.ge.s32.totalorder %s2121_s18, 1  ;;  %s2121_s18 = sphi %s2153_s18, %s15_s18  }
   0x2   : > { %p188_p1 = scmp.lt.s32.totalorder %s2121_s18, 5 }
   0x4   : > { %p189_p2 = pnand %p1525_p0, %p188_p1 }
   0x5   : > { %v263_v0 = vld [vmem:[%s2753_s1] sm:$0xff] (!%p189_p2)  ;;  %v264_v1 = vld [vmem:[%s2753_s1 + $0x8] sm:$0xff] (!%p189_p2)  ;;  %s1526_s24 = sshll.u32 (!%p189_p2), %s1521_s19, 5  ;;  %vm269_vm0 = vcmask (!%p189_p2), 130048   ;;  %v625_v9 = vld [vmem:[%s2754_s2 + $0x10] sm:$0xff] (!%p189_p2) }
   0x6   : > { %192 = sbr.rel (%p189_p2) target bundleno = 1046 (0x416), region = 40  ;;  %v623_v2 = vld [vmem:[%s2754_s2] sm:$0xff] (!%p189_p2)  ;;  %v1909_v3 = vpack.c.bf16 (!%p189_p2), %v264_v1, %v263_v0  ;;  %p217_p3 = scmp.lt.s32.totalorder (!%p189_p2), %s1526_s24, 127  ;;  %v624_v4 = vld [vmem:[%s2754_s2 + $0x8] sm:$0xff] (!%p189_p2)  ;;  %v626_v10 = vld [vmem:[%s2754_s2 + $0x18] sm:$0xff] (!%p189_p2) }
   0x7   : > { %v1913_v5 = vpack.c.bf16 (!%p189_p2), %v624_v4, %v623_v2  ;;  %v1917_v15 = vpack.c.bf16 (!%p189_p2), %v626_v10, %v625_v9  ;;  %v627_v17 = vld [vmem:[%s2754_s2 + $0x20] sm:$0xff] (!%p189_p2)  ;;  %v628_v18 = vld [vmem:[%s2754_s2 + $0x28] sm:$0xff] (!%p189_p2)  ;;  %v629_v24 = vld [vmem:[%s2754_s2 + $0x30] sm:$0xff] (!%p189_p2) }
   0x8   : > { %1910 = vmatprep.subr.bf16.mxu0 (!%p189_p2), %v1909_v3  ;;  %1977 = vmatprep.subr.bf16.mxu1 (!%p189_p2), %v1909_v3  ;;  %v1921_v23 = vpack.c.bf16 (!%p189_p2), %v628_v18, %v627_v17  ;;  %v630_v25 = vld [vmem:[%s2754_s2 + $0x38] sm:$0xff] (!%p189_p2)  ;;  %v631_v31 = vld [vmem:[%s2754_s2 + $0x40] sm:$0xff] (!%p189_p2)  ;;  %v632_v32 = vld [vmem:[%s2754_s2 + $0x48] sm:$0xff] (!%p189_p2) }
   0x9   : > { %1912 = vmatpush3.bf16.msra.mxu0 (!%p189_p2), %v1909_v3  ;;  %1978 = vmatpush3.bf16.msra.mxu1 (!%p189_p2), %v1909_v3  ;;  %v1925_v30 = vpack.c.bf16 (!%p189_p2), %v630_v25, %v629_v24  ;;  %v1929_v37 = vpack.c.bf16 (!%p189_p2), %v632_v32, %v631_v31  ;;  %v633_v38 = vld [vmem:[%s2754_s2 + $0x50] sm:$0xff] (!%p189_p2)  ;;  %v634_v39 = vld [vmem:[%s2754_s2 + $0x58] sm:$0xff] (!%p189_p2)  ;;  %v635_v45 = vld [vmem:[%s2754_s2 + $0x60] sm:$0xff] (!%p189_p2) }
   0xa   : > { %1914 = vmatprep.subr.bf16.mxu1 (!%p189_p2), %v1913_v5  ;;  %v1933_v44 = vpack.c.bf16 (!%p189_p2), %v634_v39, %v633_v38  ;;  %v636_v46 = vld [vmem:[%s2754_s2 + $0x68] sm:$0xff] (!%p189_p2)  ;;  %v637_v56 = vld [vmem:[%s2754_s2 + $0x70] sm:$0xff] (!%p189_p2)  ;;  %v638_v57 = vld [vmem:[%s2754_s2 + $0x78] sm:$0xff] (!%p189_p2) }
   0xb   : > { %v1937_v51 = vpack.c.bf16 (!%p189_p2), %v636_v46, %v635_v45  ;;  %v1941_v58 = vpack.c.bf16 (!%p189_p2), %v638_v57, %v637_v56  ;;  %v900_v59 = vld [vmem:[%s2755_s3] sm:$0xff] (!%p189_p2)  ;;  %v901_v60 = vld [vmem:[%s2755_s3 + $0x8] sm:$0xff] (!%p189_p2)  ;;  %v902_v61 = vld [vmem:[%s2755_s3 + $0x10] sm:$0xff] (!%p189_p2) }
   0xc   : > { %v1945_v62 = vpack.c.bf16 (!%p189_p2), %v901_v60, %v900_v59  ;;  %v903_v63 = vld [vmem:[%s2755_s3 + $0x18] sm:$0xff] (!%p189_p2)  ;;  %v904_v1 = vld [vmem:[%s2755_s3 + $0x20] sm:$0xff] (!%p189_p2)  ;;  %v905_v2 = vld [vmem:[%s2755_s3 + $0x28] sm:$0xff] (!%p189_p2) }
   0xd   : > { %s2759_s24 = smov (!%p217_p3, %s1526_s24), 127  ;;  %v1949_v0 = vpack.c.bf16 %v903_v63, %v902_v61  ;;  %v1953_v3 = vpack.c.bf16 %v905_v2, %v904_v1  ;;  %v906_v4 = vld [vmem:[%s2755_s3 + $0x30] sm:$0xff] }
   0xe   : > { %s1527_s29 = sshll.u32 %s2759_s24, 3  ;;  %1946 = vmatprep.subr.bf16.mxu0 %v1945_v62  ;;  %v910_v10 = vld [vmem:[%s2755_s3 + $0x50] sm:$0xff] }
   0xf   : > { %s2181_s7 = scalar_lea.vmem %s2752_s0, %s1527_s29  ;;  %s2683_s11 = scalar_lea.vmem %s2757_s5, %s1527_s29 }
  0x10   : > { %v228_v6 = vld [vmem:[%s2181_s7] sm:$0xff]  ;;  %v229_v7 = vld [vmem:[%s2181_s7 + $0x8] sm:$0xff]  ;;  %v230_v8 = vld [vmem:[%s2181_s7 + $0x10] sm:$0xff] }
  0x11   : > { %1701 = vmatprep.mubr.msk.f32.mxu0 %vm269_vm0, %v228_v6  ;;  %v231_v11 = vld [vmem:[%s2181_s7 + $0x18] sm:$0xff]  ;;  %v232_v12 = vld [vmem:[%s2181_s7 + $0x20] sm:$0xff]  ;;  %v245_v14 = vld [vmem:[%s2181_s7 + $0x88] sm:$0xff] }
  0x12   : > { %1702 = vmatmul.mubr.msk.f32.vlgmr.msra.gmra.mrb[0].mxu0 %vm269_vm0, %v229_v7  ;;  %v244_v13 = vld [vmem:[%s2181_s7 + $0x80] sm:$0xff]  ;;  %v246_v16 = vld [vmem:[%s2181_s7 + $0x90] sm:$0xff]  ;;  %v233_v19 = vld [vmem:[%s2181_s7 + $0x28] sm:$0xff] }
  0x13   : > { %1704 = vmatprep.mubr.msk.f32.mxu0 %vm269_vm0, %v230_v8  ;;  %1725 = vmatprep.mubr.msk.f32.mxu1 %vm269_vm0, %v244_v13  ;;  %v234_v20 = vld [vmem:[%s2181_s7 + $0x30] sm:$0xff]  ;;  %v247_v21 = vld [vmem:[%s2181_s7 + $0x98] sm:$0xff]  ;;  %v248_v22 = vld [vmem:[%s2181_s7 + $0xa0] sm:$0xff] }
  0x14   : > { %1726 = vmatmul.mubr.msk.f32.vlgmr.msra.gmra.mrb[0].mxu1 %vm269_vm0, %v245_v14  ;;  %v235_v26 = vld [vmem:[%s2181_s7 + $0x38] sm:$0xff]  ;;  %v236_v27 = vld [vmem:[%s2181_s7 + $0x40] sm:$0xff]  ;;  %v249_v28 = vld [vmem:[%s2181_s7 + $0xa8] sm:$0xff]  ;;  %1948 = vmatpush3.bf16.msra.mxu0 %v1945_v62 }
  0x15   : > { %1728 = vmatprep.mubr.msk.f32.mxu1 %vm269_vm0, %v246_v16  ;;  %1916 = vmatpush3.bf16.msra.mxu1 %v1913_v5  ;;  %v250_v29 = vld [vmem:[%s2181_s7 + $0xb0] sm:$0xff]  ;;  %v237_v33 = vld [vmem:[%s2181_s7 + $0x48] sm:$0xff]  ;;  %v251_v35 = vld [vmem:[%s2181_s7 + $0xb8] sm:$0xff] }
  0x16   : > { %1705 = vmatmul.mubr.msk.f32.gmra.mrb[2].mxu0 %vm269_vm0, %v231_v11  ;;  %1918 = vmatprep.subr.bf16.mxu1 %v1917_v15  ;;  %v238_v34 = vld [vmem:[%s2181_s7 + $0x50] sm:$0xff]  ;;  %v252_v36 = vld [vmem:[%s2181_s7 + $0xc0] sm:$0xff]  ;;  %v239_v40 = vld [vmem:[%s2181_s7 + $0x58] sm:$0xff] }
  0x17   : > { %1707 = vmatprep.mubr.msk.f32.mxu0 %vm269_vm0, %v232_v12  ;;  %v240_v41 = vld [vmem:[%s2181_s7 + $0x60] sm:$0xff]  ;;  %v253_v42 = vld [vmem:[%s2181_s7 + $0xc8] sm:$0xff]  ;;  %v254_v43 = vld [vmem:[%s2181_s7 + $0xd0] sm:$0xff]  ;;  %1950 = vmatprep.subr.bf16.mxu0 %v1949_v0 }
  0x18   : > { %1729 = vmatmul.mubr.msk.f32.gmra.mrb[2].mxu1 %vm269_vm0, %v247_v21  ;;  %v241_v47 = vld [vmem:[%s2181_s7 + $0x68] sm:$0xff]  ;;  %v242_v48 = vld [vmem:[%s2181_s7 + $0x70] sm:$0xff]  ;;  %v255_v49 = vld [vmem:[%s2181_s7 + $0xd8] sm:$0xff]  ;;  %1952 = vmatpush3.bf16.msra.mxu0 %v1949_v0 }
  0x19   : > { %1731 = vmatprep.mubr.msk.f32.mxu1 %vm269_vm0, %v248_v22  ;;  %1920 = vmatpush3.bf16.msra.mxu1 %v1917_v15  ;;  %v256_v50 = vld [vmem:[%s2181_s7 + $0xe0] sm:$0xff]  ;;  %v243_v52 = vld [vmem:[%s2181_s7 + $0x78] sm:$0xff]  ;;  %v257_v53 = vld [vmem:[%s2181_s7 + $0xe8] sm:$0xff] }
  0x1a   : > { %1708 = vmatmul.mubr.msk.f32.gmra.mrb[4].mxu0 %vm269_vm0, %v233_v19  ;;  %1922 = vmatprep.subr.bf16.mxu1 %v1921_v23  ;;  %v258_v54 = vld [vmem:[%s2181_s7 + $0xf0] sm:$0xff]  ;;  %v259_v55 = vld [vmem:[%s2181_s7 + $0xf8] sm:$0xff]  ;;  %v908_v7 = vld [vmem:[%s2755_s3 + $0x40] sm:$0xff] }
  0x1b   : > { %1710 = vmatprep.mubr.msk.f32.mxu0 %vm269_vm0, %v234_v20  ;;  %v907_v5 = vld [vmem:[%s2755_s3 + $0x38] sm:$0xff]  ;;  %1954 = vmatprep.subr.bf16.mxu0 %v1953_v3  ;;  %v909_v8 = vld [vmem:[%s2755_s3 + $0x48] sm:$0xff]  ;;  %v912_v13 = vld [vmem:[%s2755_s3 + $0x60] sm:$0xff] }
  0x1c   : > { %1732 = vmatmul.mubr.msk.f32.gmra.mrb[4].mxu1 %vm269_vm0, %v249_v28  ;;  %v1957_v6 = vpack.c.bf16 %v907_v5, %v906_v4  ;;  %1956 = vmatpush3.bf16.msra.mxu0 %v1953_v3  ;;  %v1961_v9 = vpack.c.bf16 %v909_v8, %v908_v7  ;;  %v911_v11 = vld [vmem:[%s2755_s3 + $0x58] sm:$0xff]  ;;  %v913_v14 = vld [vmem:[%s2755_s3 + $0x68] sm:$0xff]  ;;  %v2334_v16 = vld [vmem:[%s2756_s4] ss:$0 sm:$0xff] }
  0x1d   : > { %1734 = vmatprep.mubr.msk.f32.mxu1 %vm269_vm0, %v250_v29  ;;  %1924 = vmatpush3.bf16.msra.mxu1 %v1921_v23  ;;  %v1965_v12 = vpack.c.bf16 %v911_v11, %v910_v10  ;;  %v1969_v15 = vpack.c.bf16 %v913_v14, %v912_v13 }
  0x1e   : > { %1711 = vmatmul.mubr.msk.f32.gmra.mrb[6].mxu0 %vm269_vm0, %v235_v26  ;;  %1926 = vmatprep.subr.bf16.mxu1 %v1925_v30 }
  0x1f   : > { %1713 = vmatprep.mubr.msk.f32.mxu0 %vm269_vm0, %v236_v27  ;;  %1958 = vmatprep.subr.bf16.mxu0 %v1957_v6 }
  0x20   : > { %1735 = vmatmul.mubr.msk.f32.gmra.mrb[6].mxu1 %vm269_vm0, %v251_v35  ;;  %1960 = vmatpush3.bf16.msra.mxu0 %v1957_v6 }
  0x21   : > { %1737 = vmatprep.mubr.msk.f32.mxu1 %vm269_vm0, %v252_v36  ;;  %1928 = vmatpush3.bf16.msra.mxu1 %v1925_v30 }
  0x22   : > { %1714 = vmatmul.mubr.msk.f32.gmra.mrb[8].mxu0 %vm269_vm0, %v237_v33  ;;  %1930 = vmatprep.subr.bf16.mxu1 %v1929_v37 }
  0x23   : > { %1716 = vmatprep.mubr.msk.f32.mxu0 %vm269_vm0, %v238_v34  ;;  %1962 = vmatprep.subr.bf16.mxu0 %v1961_v9 }
  0x24   : > { %1738 = vmatmul.mubr.msk.f32.gmra.mrb[8].mxu1 %vm269_vm0, %v253_v42  ;;  %1964 = vmatpush3.bf16.msra.mxu0 %v1961_v9 }
  0x25   : > { %1740 = vmatprep.mubr.msk.f32.mxu1 %vm269_vm0, %v254_v43  ;;  %1932 = vmatpush3.bf16.msra.mxu1 %v1929_v37 }
  0x26   : > { %1717 = vmatmul.mubr.msk.f32.gmra.mrb[10].mxu0 %vm269_vm0, %v239_v40  ;;  %1934 = vmatprep.subr.bf16.mxu1 %v1933_v44 }
  0x27   : > { %1719 = vmatprep.mubr.msk.f32.mxu0 %vm269_vm0, %v240_v41  ;;  %1966 = vmatprep.subr.bf16.mxu0 %v1965_v12 }
  0x28   : > { %1741 = vmatmul.mubr.msk.f32.gmra.mrb[10].mxu1 %vm269_vm0, %v255_v49  ;;  %1968 = vmatpush3.bf16.msra.mxu0 %v1965_v12 }
  0x29   : > { %1743 = vmatprep.mubr.msk.f32.mxu1 %vm269_vm0, %v256_v50  ;;  %1936 = vmatpush3.bf16.msra.mxu1 %v1933_v44 }
  0x2a   : > { %1720 = vmatmul.mubr.msk.f32.gmra.mrb[12].mxu0 %vm269_vm0, %v241_v47  ;;  %1938 = vmatprep.subr.bf16.mxu1 %v1937_v51 }
  0x2b   : > { %1722 = vmatprep.mubr.msk.f32.mxu0 %vm269_vm0, %v242_v48  ;;  %1970 = vmatprep.subr.bf16.mxu0 %v1969_v15 }
  0x2c   : > { %1744 = vmatmul.mubr.msk.f32.gmra.mrb[12].mxu1 %vm269_vm0, %v257_v53  ;;  %1972 = vmatpush3.bf16.msra.mxu0 %v1969_v15 }
  0x2d   : > { %1746 = vmatprep.mubr.msk.f32.mxu1 %vm269_vm0, %v258_v54  ;;  %1940 = vmatpush3.bf16.msra.mxu1 %v1937_v51 }
  0x2e   : > { %1723 = vmatmul.mubr.msk.f32.gmra.mrb[14].mxu0 %vm269_vm0, %v243_v52  ;;  %1942 = vmatprep.subr.bf16.mxu1 %v1941_v58 }
  0x30   : > { %1747 = vmatmul.mubr.msk.f32.gmra.mrb[14].mxu1 %vm269_vm0, %v259_v55 }
  0x31   : > { %1944 = vmatpush3.bf16.msra.mxu1 %v1941_v58 }
  0xe5   : > { %v1703_v17 = vpop.f32.mrb[0].mxu0 }
  0xe6   : > { %v438_v18 = vadd.f32 %v1703_v17, %v2334_v16  ;;  %v432_v19 = vpop.f32.mrb[1].mxu0 }
  0xe7   : > { %v433_v20 = vadd.f32 %v2334_v16, %v432_v19  ;;  %v2339_v26 = vpop.f32.mrb[0].mxu1 }
  0xe8   : > { %v592_v23 = vmax.f32 %v438_v18, 0.0  ;;  %v512_v28 = vpop.f32.mrb[1].mxu1  ;;  %v518_v15 = vadd.f32 %v2339_v26, %v2334_v16 }
  0xe9   : > { %v591_v21 = vmax.f32 %v433_v20, 0.0  ;;  %v1706_v22 = vpop.f32.mrb[2].mxu0  ;;  %v513_v8 = vadd.f32 %v2334_v16, %v512_v28 }
  0xea   : > { %v448_v24 = vadd.f32 %v1706_v22, %v2334_v16  ;;  %v442_v25 = vpop.f32.mrb[3].mxu0  ;;  %v608_v22 = vmax.f32 %v518_v15, 0.0 }
  0xeb   : > { %v443_v27 = vadd.f32 %v2334_v16, %v442_v25  ;;  %1781 = vmatprep.mubr.f32.mxu1 %v591_v21  ;;  %v2343_v34 = vpop.f32.mrb[2].mxu1  ;;  %v607_v18 = vmax.f32 %v513_v8, 0.0 }
  0xec   : > { %1782 = vmatmul.mubr.f32.vlgmr.msra.gmra.mrb[16].mxu1 %v592_v23  ;;  %v594_v31 = vmax.f32 %v448_v24, 0.0  ;;  %v522_v36 = vpop.f32.mrb[3].mxu1  ;;  %v528_v23 = vadd.f32 %v2343_v34, %v2334_v16 }
  0xed   : > { %v593_v29 = vmax.f32 %v443_v27, 0.0  ;;  %v1709_v30 = vpop.f32.mrb[4].mxu0  ;;  %v523_v19 = vadd.f32 %v2334_v16, %v522_v36 }
  0xee   : > { %v458_v32 = vadd.f32 %v1709_v30, %v2334_v16  ;;  %v452_v33 = vpop.f32.mrb[5].mxu0  ;;  %v610_v27 = vmax.f32 %v528_v23, 0.0 }
  0xef   : > { %v453_v35 = vadd.f32 %v2334_v16, %v452_v33  ;;  %1784 = vmatprep.mubr.f32.mxu1 %v593_v29  ;;  %v1733_v42 = vpop.f32.mrb[4].mxu1  ;;  %v609_v24 = vmax.f32 %v523_v19, 0.0 }
  0xf0   : > { %v596_v37 = vmax.f32 %v458_v32, 0.0  ;;  %1785 = vmatmul.mubr.f32.gmra.mrb[18].mxu1 %v594_v31  ;;  %v532_v44 = vpop.f32.mrb[5].mxu1  ;;  %v538_v26 = vadd.f32 %v1733_v42, %v2334_v16 }
  0xf1   : > { %v595_v38 = vmax.f32 %v453_v35, 0.0  ;;  %v1712_v39 = vpop.f32.mrb[6].mxu0  ;;  %v533_v25 = vadd.f32 %v2334_v16, %v532_v44 }
  0xf2   : > { %v468_v40 = vadd.f32 %v1712_v39, %v2334_v16  ;;  %v462_v41 = vpop.f32.mrb[7].mxu0  ;;  %v612_v30 = vmax.f32 %v538_v26, 0.0 }
  0xf3   : > { %v463_v43 = vadd.f32 %v2334_v16, %v462_v41  ;;  %1787 = vmatprep.mubr.f32.mxu1 %v595_v38  ;;  %v1736_v50 = vpop.f32.mrb[6].mxu1  ;;  %v611_v28 = vmax.f32 %v533_v25, 0.0 }
  0xf4   : > { %v598_v45 = vmax.f32 %v468_v40, 0.0  ;;  %1788 = vmatmul.mubr.f32.gmra.mrb[20].mxu1 %v596_v37  ;;  %v542_v52 = vpop.f32.mrb[7].mxu1  ;;  %v548_v31 = vadd.f32 %v1736_v50, %v2334_v16  ;;  %v914_v50 = vld [vmem:[%s2755_s3 + $0x70] sm:$0xff] }
  0xf5   : > { %v597_v46 = vmax.f32 %v463_v43, 0.0  ;;  %v1715_v47 = vpop.f32.mrb[8].mxu0  ;;  %v543_v29 = vadd.f32 %v2334_v16, %v542_v52 }
  0xf6   : > { %v478_v48 = vadd.f32 %v1715_v47, %v2334_v16  ;;  %v472_v49 = vpop.f32.mrb[9].mxu0  ;;  %v614_v34 = vmax.f32 %v548_v31, 0.0 }
  0xf7   : > { %v473_v51 = vadd.f32 %v2334_v16, %v472_v49  ;;  %1790 = vmatprep.mubr.f32.mxu1 %v597_v46  ;;  %v1739_v58 = vpop.f32.mrb[8].mxu1  ;;  %v613_v32 = vmax.f32 %v543_v29, 0.0 }
  0xf8   : > { %v600_v53 = vmax.f32 %v478_v48, 0.0  ;;  %1791 = vmatmul.mubr.f32.gmra.mrb[22].mxu1 %v598_v45  ;;  %v552_v60 = vpop.f32.mrb[9].mxu1  ;;  %v558_v35 = vadd.f32 %v1739_v58, %v2334_v16 }
  0xf9   : > { %v599_v54 = vmax.f32 %v473_v51, 0.0  ;;  %v1718_v55 = vpop.f32.mrb[10].mxu0  ;;  %v553_v33 = vadd.f32 %v2334_v16, %v552_v60  ;;  %v915_v51 = vld [vmem:[%s2755_s3 + $0x78] sm:$0xff] }
  0xfa   : > { %v488_v56 = vadd.f32 %v1718_v55, %v2334_v16  ;;  %v482_v57 = vpop.f32.mrb[11].mxu0  ;;  %v616_v38 = vmax.f32 %v558_v35, 0.0  ;;  %v1973_v52 = vpack.c.bf16 %v915_v51, %v914_v50 }
  0xfb   : > { %v483_v59 = vadd.f32 %v2334_v16, %v482_v57  ;;  %1793 = vmatprep.mubr.f32.mxu1 %v599_v54  ;;  %v1742_v2 = vpop.f32.mrb[10].mxu1  ;;  %v615_v36 = vmax.f32 %v553_v33, 0.0 }
  0xfc   : > { %v602_v61 = vmax.f32 %v488_v56, 0.0  ;;  %1794 = vmatmul.mubr.f32.gmra.mrb[24].mxu1 %v600_v53  ;;  %v562_v4 = vpop.f32.mrb[11].mxu1  ;;  %v568_v39 = vadd.f32 %v1742_v2, %v2334_v16  ;;  %1974 = vmatprep.subr.bf16.mxu0 %v1973_v52 }
  0xfd   : > { %v601_v62 = vmax.f32 %v483_v59, 0.0  ;;  %v1721_v63 = vpop.f32.mrb[12].mxu0  ;;  %v563_v37 = vadd.f32 %v2334_v16, %v562_v4  ;;  %1976 = vmatpush3.bf16.msra.mxu0 %v1973_v52 }
  0xfe   : > { %v498_v0 = vadd.f32 %v1721_v63, %v2334_v16  ;;  %v492_v1 = vpop.f32.mrb[13].mxu0  ;;  %v618_v42 = vmax.f32 %v568_v39, 0.0 }
  0xff   : > { %v493_v3 = vadd.f32 %v2334_v16, %v492_v1  ;;  %1796 = vmatprep.mubr.f32.mxu1 %v601_v62  ;;  %v1745_v11 = vpop.f32.mrb[12].mxu1  ;;  %v617_v40 = vmax.f32 %v563_v37, 0.0 }
 0x100   : > { %v604_v5 = vmax.f32 %v498_v0, 0.0  ;;  %1797 = vmatmul.mubr.f32.gmra.mrb[26].mxu1 %v602_v61  ;;  %v572_v13 = vpop.f32.mrb[13].mxu1  ;;  %v578_v43 = vadd.f32 %v1745_v11, %v2334_v16 }
 0x101   : > { %v603_v6 = vmax.f32 %v493_v3, 0.0  ;;  %v1724_v7 = vpop.f32.mrb[14].mxu0  ;;  %v573_v41 = vadd.f32 %v2334_v16, %v572_v13 }
 0x102   : > { %v508_v9 = vadd.f32 %v1724_v7, %v2334_v16  ;;  %v502_v10 = vpop.f32.mrb[15].mxu0  ;;  %v620_v46 = vmax.f32 %v578_v43, 0.0 }
 0x103   : > { %v503_v12 = vadd.f32 %v2334_v16, %v502_v10  ;;  %1799 = vmatprep.mubr.f32.mxu1 %v603_v6  ;;  %v1748_v20 = vpop.f32.mrb[14].mxu1  ;;  %v619_v44 = vmax.f32 %v573_v41, 0.0 }
 0x104   : > { %v606_v14 = vmax.f32 %v508_v9, 0.0  ;;  %1800 = vmatmul.mubr.f32.gmra.mrb[28].mxu1 %v604_v5  ;;  %v582_v21 = vpop.f32.mrb[15].mxu1  ;;  %v588_v47 = vadd.f32 %v1748_v20, %v2334_v16 }
 0x105   : > { %v605_v17 = vmax.f32 %v503_v12, 0.0  ;;  %v583_v45 = vadd.f32 %v2334_v16, %v582_v21  ;;  %v2383_v16 = vld [vmem:[%s2756_s4 + $0x1] ss:$0 sm:$0xff] }
 0x106   : > { %v622_v49 = vmax.f32 %v588_v47, 0.0 }
 0x107   : > { %1802 = vmatprep.mubr.f32.mxu1 %v605_v17  ;;  %v621_v48 = vmax.f32 %v583_v45, 0.0 }
 0x108   : > { %1803 = vmatmul.mubr.f32.gmra.mrb[30].mxu1 %v606_v14 }
 0x109   : > { %1805 = vmatprep.mubr.f32.mxu1 %v607_v18 }
 0x10c   : > { %1806 = vmatmul.mubr.f32.gmra.mrb[32].mxu1 %v608_v22 }
 0x10d   : > { %1808 = vmatprep.mubr.f32.mxu1 %v609_v24 }
 0x110   : > { %1809 = vmatmul.mubr.f32.gmra.mrb[34].mxu1 %v610_v27 }
 0x111   : > { %1811 = vmatprep.mubr.f32.mxu1 %v611_v28 }
 0x114   : > { %1812 = vmatmul.mubr.f32.gmra.mrb[36].mxu1 %v612_v30 }
 0x115   : > { %1814 = vmatprep.mubr.f32.mxu1 %v613_v32 }
 0x118   : > { %1815 = vmatmul.mubr.f32.gmra.mrb[38].mxu1 %v614_v34 }
 0x119   : > { %1817 = vmatprep.mubr.f32.mxu1 %v615_v36 }
 0x11c   : > { %1818 = vmatmul.mubr.f32.gmra.mrb[40].mxu1 %v616_v38 }
 0x11d   : > { %1820 = vmatprep.mubr.f32.mxu1 %v617_v40 }
 0x120   : > { %1821 = vmatmul.mubr.f32.gmra.mrb[42].mxu1 %v618_v42 }
 0x121   : > { %1823 = vmatprep.mubr.f32.mxu1 %v619_v44 }
 0x124   : > { %1824 = vmatmul.mubr.f32.gmra.mrb[44].mxu1 %v620_v46 }
 0x125   : > { %1826 = vmatprep.mubr.f32.mxu1 %v621_v48 }
 0x128   : > { %1827 = vmatmul.mubr.f32.gmra.mrb[46].mxu1 %v622_v49 }
 0x1bf   : > { %v1783_v53 = vpop.f32.mrb[16].mxu1 }
 0x1c0   : > { %v715_v54 = vadd.f32 %v1783_v53, %v2383_v16  ;;  %v709_v55 = vpop.f32.mrb[17].mxu1 }
 0x1c1   : > { %v710_v56 = vadd.f32 %v2383_v16, %v709_v55 }
 0x1c2   : > { %v869_v59 = vmax.f32 %v715_v54, 0.0 }
 0x1c3   : > { %v868_v57 = vmax.f32 %v710_v56, 0.0  ;;  %v1786_v58 = vpop.f32.mrb[18].mxu1 }
 0x1c4   : > { %v725_v60 = vadd.f32 %v1786_v58, %v2383_v16  ;;  %v719_v61 = vpop.f32.mrb[19].mxu1 }
 0x1c5   : > { %v720_v62 = vadd.f32 %v2383_v16, %v719_v61  ;;  %1861 = vmatprep.mubr.f32.mxu0 %v868_v57 }
 0x1c6   : > { %1862 = vmatmul.mubr.f32.vlgmr.msra.gmra.mrb[16].mxu0 %v869_v59  ;;  %v871_v1 = vmax.f32 %v725_v60, 0.0 }
 0x1c7   : > { %v870_v63 = vmax.f32 %v720_v62, 0.0  ;;  %v1789_v0 = vpop.f32.mrb[20].mxu1 }
 0x1c8   : > { %v735_v2 = vadd.f32 %v1789_v0, %v2383_v16  ;;  %v729_v3 = vpop.f32.mrb[21].mxu1 }
 0x1c9   : > { %v730_v4 = vadd.f32 %v2383_v16, %v729_v3  ;;  %1864 = vmatprep.mubr.f32.mxu0 %v870_v63 }
 0x1ca   : > { %v873_v5 = vmax.f32 %v735_v2, 0.0  ;;  %1865 = vmatmul.mubr.f32.gmra.mrb[18].mxu0 %v871_v1 }
 0x1cb   : > { %v872_v6 = vmax.f32 %v730_v4, 0.0  ;;  %v1792_v7 = vpop.f32.mrb[22].mxu1 }
 0x1cc   : > { %v745_v8 = vadd.f32 %v1792_v7, %v2383_v16  ;;  %v739_v9 = vpop.f32.mrb[23].mxu1 }
 0x1cd   : > { %v740_v10 = vadd.f32 %v2383_v16, %v739_v9  ;;  %1867 = vmatprep.mubr.f32.mxu0 %v872_v6 }
 0x1ce   : > { %v875_v11 = vmax.f32 %v745_v8, 0.0  ;;  %1868 = vmatmul.mubr.f32.gmra.mrb[20].mxu0 %v873_v5 }
 0x1cf   : > { %v874_v12 = vmax.f32 %v740_v10, 0.0  ;;  %v1795_v13 = vpop.f32.mrb[24].mxu1 }
 0x1d0   : > { %v755_v14 = vadd.f32 %v1795_v13, %v2383_v16  ;;  %v749_v15 = vpop.f32.mrb[25].mxu1 }
 0x1d1   : > { %v750_v17 = vadd.f32 %v2383_v16, %v749_v15  ;;  %1870 = vmatprep.mubr.f32.mxu0 %v874_v12 }
 0x1d2   : > { %v877_v18 = vmax.f32 %v755_v14, 0.0  ;;  %1871 = vmatmul.mubr.f32.gmra.mrb[22].mxu0 %v875_v11 }
 0x1d3   : > { %v876_v19 = vmax.f32 %v750_v17, 0.0  ;;  %v1798_v20 = vpop.f32.mrb[26].mxu1 }
 0x1d4   : > { %v765_v21 = vadd.f32 %v1798_v20, %v2383_v16  ;;  %v759_v22 = vpop.f32.mrb[27].mxu1 }
 0x1d5   : > { %v760_v23 = vadd.f32 %v2383_v16, %v759_v22  ;;  %1873 = vmatprep.mubr.f32.mxu0 %v876_v19 }
 0x1d6   : > { %v879_v24 = vmax.f32 %v765_v21, 0.0  ;;  %1874 = vmatmul.mubr.f32.gmra.mrb[24].mxu0 %v877_v18 }
 0x1d7   : > { %v878_v25 = vmax.f32 %v760_v23, 0.0  ;;  %v1801_v27 = vpop.f32.mrb[28].mxu1  ;;  %v2420_v23 = vld [vmem:[%s2756_s4 + $0x2] ss:$0 sm:$0xff] }
 0x1d8   : > { %v775_v26 = vadd.f32 %v1801_v27, %v2383_v16  ;;  %v769_v28 = vpop.f32.mrb[29].mxu1 }
 0x1d9   : > { %v770_v29 = vadd.f32 %v2383_v16, %v769_v28  ;;  %1876 = vmatprep.mubr.f32.mxu0 %v878_v25 }
 0x1da   : > { %v881_v30 = vmax.f32 %v775_v26, 0.0  ;;  %1877 = vmatmul.mubr.f32.gmra.mrb[26].mxu0 %v879_v24 }
 0x1db   : > { %v880_v31 = vmax.f32 %v770_v29, 0.0  ;;  %v1804_v32 = vpop.f32.mrb[30].mxu1 }
 0x1dc   : > { %v785_v33 = vadd.f32 %v1804_v32, %v2383_v16  ;;  %v779_v34 = vpop.f32.mrb[31].mxu1 }
 0x1dd   : > { %v780_v35 = vadd.f32 %v2383_v16, %v779_v34  ;;  %1879 = vmatprep.mubr.f32.mxu0 %v880_v31 }
 0x1de   : > { %v883_v36 = vmax.f32 %v785_v33, 0.0  ;;  %1880 = vmatmul.mubr.f32.gmra.mrb[28].mxu0 %v881_v30 }
 0x1df   : > { %v882_v37 = vmax.f32 %v780_v35, 0.0  ;;  %v1807_v38 = vpop.f32.mrb[32].mxu1 }
 0x1e0   : > { %v795_v39 = vadd.f32 %v1807_v38, %v2383_v16  ;;  %v789_v40 = vpop.f32.mrb[33].mxu1 }
 0x1e1   : > { %v790_v41 = vadd.f32 %v2383_v16, %v789_v40  ;;  %1882 = vmatprep.mubr.f32.mxu0 %v882_v37 }
 0x1e2   : > { %v885_v42 = vmax.f32 %v795_v39, 0.0  ;;  %1883 = vmatmul.mubr.f32.gmra.mrb[30].mxu0 %v883_v36 }
 0x1e3   : > { %v884_v43 = vmax.f32 %v790_v41, 0.0  ;;  %v1810_v44 = vpop.f32.mrb[34].mxu1 }
 0x1e4   : > { %v805_v45 = vadd.f32 %v1810_v44, %v2383_v16  ;;  %v799_v46 = vpop.f32.mrb[35].mxu1 }
 0x1e5   : > { %v800_v47 = vadd.f32 %v2383_v16, %v799_v46  ;;  %1885 = vmatprep.mubr.f32.mxu0 %v884_v43 }
 0x1e6   : > { %v887_v48 = vmax.f32 %v805_v45, 0.0  ;;  %1886 = vmatmul.mubr.f32.gmra.mrb[32].mxu0 %v885_v42 }
 0x1e7   : > { %v886_v49 = vmax.f32 %v800_v47, 0.0  ;;  %v1813_v50 = vpop.f32.mrb[36].mxu1 }
 0x1e8   : > { %v815_v51 = vadd.f32 %v1813_v50, %v2383_v16  ;;  %v809_v52 = vpop.f32.mrb[37].mxu1 }
 0x1e9   : > { %v810_v53 = vadd.f32 %v2383_v16, %v809_v52  ;;  %1888 = vmatprep.mubr.f32.mxu0 %v886_v49 }
 0x1ea   : > { %v889_v54 = vmax.f32 %v815_v51, 0.0  ;;  %1889 = vmatmul.mubr.f32.gmra.mrb[34].mxu0 %v887_v48 }
 0x1eb   : > { %v888_v55 = vmax.f32 %v810_v53, 0.0  ;;  %v1816_v56 = vpop.f32.mrb[38].mxu1 }
 0x1ec   : > { %v825_v57 = vadd.f32 %v1816_v56, %v2383_v16  ;;  %v819_v58 = vpop.f32.mrb[39].mxu1 }
 0x1ed   : > { %v820_v59 = vadd.f32 %v2383_v16, %v819_v58  ;;  %1891 = vmatprep.mubr.f32.mxu0 %v888_v55 }
 0x1ee   : > { %v891_v60 = vmax.f32 %v825_v57, 0.0  ;;  %1892 = vmatmul.mubr.f32.gmra.mrb[36].mxu0 %v889_v54 }
 0x1ef   : > { %v890_v61 = vmax.f32 %v820_v59, 0.0  ;;  %v1819_v62 = vpop.f32.mrb[40].mxu1 }
 0x1f0   : > { %v835_v63 = vadd.f32 %v1819_v62, %v2383_v16  ;;  %v829_v0 = vpop.f32.mrb[41].mxu1 }
 0x1f1   : > { %v830_v1 = vadd.f32 %v2383_v16, %v829_v0  ;;  %1894 = vmatprep.mubr.f32.mxu0 %v890_v61 }
 0x1f2   : > { %v893_v2 = vmax.f32 %v835_v63, 0.0  ;;  %1895 = vmatmul.mubr.f32.gmra.mrb[38].mxu0 %v891_v60 }
 0x1f3   : > { %v892_v3 = vmax.f32 %v830_v1, 0.0  ;;  %v1822_v4 = vpop.f32.mrb[42].mxu1 }
 0x1f4   : > { %v845_v5 = vadd.f32 %v1822_v4, %v2383_v16  ;;  %v839_v6 = vpop.f32.mrb[43].mxu1 }
 0x1f5   : > { %v840_v7 = vadd.f32 %v2383_v16, %v839_v6  ;;  %1897 = vmatprep.mubr.f32.mxu0 %v892_v3 }
 0x1f6   : > { %v895_v8 = vmax.f32 %v845_v5, 0.0  ;;  %1898 = vmatmul.mubr.f32.gmra.mrb[40].mxu0 %v893_v2 }
 0x1f7   : > { %v894_v9 = vmax.f32 %v840_v7, 0.0  ;;  %v1825_v10 = vpop.f32.mrb[44].mxu1 }
 0x1f8   : > { %v855_v11 = vadd.f32 %v1825_v10, %v2383_v16  ;;  %v849_v12 = vpop.f32.mrb[45].mxu1 }
 0x1f9   : > { %v850_v13 = vadd.f32 %v2383_v16, %v849_v12  ;;  %1900 = vmatprep.mubr.f32.mxu0 %v894_v9 }
 0x1fa   : > { %v897_v14 = vmax.f32 %v855_v11, 0.0  ;;  %1901 = vmatmul.mubr.f32.gmra.mrb[42].mxu0 %v895_v8 }
 0x1fb   : > { %v896_v15 = vmax.f32 %v850_v13, 0.0  ;;  %v1828_v17 = vpop.f32.mrb[46].mxu1 }
 0x1fc   : > { %v865_v18 = vadd.f32 %v1828_v17, %v2383_v16  ;;  %v859_v19 = vpop.f32.mrb[47].mxu1 }
 0x1fd   : > { %v860_v20 = vadd.f32 %v2383_v16, %v859_v19  ;;  %1903 = vmatprep.mubr.f32.mxu0 %v896_v15 }
 0x1fe   : > { %v899_v21 = vmax.f32 %v865_v18, 0.0  ;;  %1904 = vmatmul.mubr.f32.gmra.mrb[44].mxu0 %v897_v14 }
 0x1ff   : > { %v898_v22 = vmax.f32 %v860_v20, 0.0 }
 0x201   : > { %1906 = vmatprep.mubr.f32.mxu0 %v898_v22 }
 0x202   : > { %1907 = vmatmul.mubr.f32.gmra.mrb[46].mxu0 %v899_v21 }
 0x299   : > { %v1863_v24 = vpop.f32.mrb[16].mxu0 }
 0x29a   : > { %v2423_v25 = vadd.f32 %v1863_v24, %v2420_v23  ;;  %v986_v27 = vpop.f32.mrb[17].mxu0 }
 0x29b   : > { %v2427_v16 = vadd.f32 %v2420_v23, %v986_v27 }
 0x29c   : > { %1147 = vmax.xlane.f32.xlu0 %v2423_v25 }
 0x29d   : > { %v1866_v26 = vpop.f32.mrb[18].mxu0 }
 0x29e   : > { %v2430_v28 = vadd.f32 %v1866_v26, %v2420_v23  ;;  %v996_v29 = vpop.f32.mrb[19].mxu0 }
 0x29f   : > { %v2435_v31 = vadd.f32 %v2420_v23, %v996_v29 }
 0x2a0   : > { %1151 = vmax.xlane.f32.xlu1 %v2430_v28  ;;  %1145 = vmax.xlane.f32.xlu0 %v2427_v16 }
 0x2a1   : > { %v1869_v30 = vpop.f32.mrb[20].mxu0 }
 0x2a2   : > { %v1006_v32 = vpop.f32.mrb[21].mxu0  ;;  %v2443_v35 = vadd.f32 %v1869_v30, %v2420_v23 }
 0x2a3   : > { %v2438_v33 = vadd.f32 %v2420_v23, %v1006_v32 }
 0x2a4   : > { %1149 = vmax.xlane.f32.xlu1 %v2435_v31 }
 0x2a5   : > { %v1872_v34 = vpop.f32.mrb[22].mxu0  ;;  %1153 = vmax.xlane.f32.xlu0 %v2438_v33 }
 0x2a6   : > { %v1016_v36 = vpop.f32.mrb[23].mxu0  ;;  %v2451_v39 = vadd.f32 %v1872_v34, %v2420_v23 }
 0x2a7   : > { %v2446_v37 = vadd.f32 %v2420_v23, %v1016_v36 }
 0x2a8   : > { %1155 = vmax.xlane.f32.xlu1 %v2443_v35 }
 0x2a9   : > { %v1875_v38 = vpop.f32.mrb[24].mxu0  ;;  %1157 = vmax.xlane.f32.xlu0 %v2446_v37 }
 0x2aa   : > { %v1026_v40 = vpop.f32.mrb[25].mxu0  ;;  %v2459_v43 = vadd.f32 %v1875_v38, %v2420_v23 }
 0x2ab   : > { %v2454_v41 = vadd.f32 %v2420_v23, %v1026_v40 }
 0x2ac   : > { %1159 = vmax.xlane.f32.xlu1 %v2451_v39 }
 0x2ad   : > { %v1878_v42 = vpop.f32.mrb[26].mxu0  ;;  %1161 = vmax.xlane.f32.xlu0 %v2454_v41 }
 0x2ae   : > { %v1036_v44 = vpop.f32.mrb[27].mxu0  ;;  %v2467_v47 = vadd.f32 %v1878_v42, %v2420_v23 }
 0x2af   : > { %v2462_v45 = vadd.f32 %v2420_v23, %v1036_v44 }
 0x2b0   : > { %1163 = vmax.xlane.f32.xlu1 %v2459_v43 }
 0x2b1   : > { %v1881_v46 = vpop.f32.mrb[28].mxu0  ;;  %1165 = vmax.xlane.f32.xlu0 %v2462_v45 }
 0x2b2   : > { %v1046_v48 = vpop.f32.mrb[29].mxu0  ;;  %v2475_v51 = vadd.f32 %v1881_v46, %v2420_v23 }
 0x2b3   : > { %v2470_v49 = vadd.f32 %v2420_v23, %v1046_v48 }
 0x2b4   : > { %1167 = vmax.xlane.f32.xlu1 %v2467_v47 }
 0x2b5   : > { %v1884_v50 = vpop.f32.mrb[30].mxu0  ;;  %1169 = vmax.xlane.f32.xlu0 %v2470_v49 }
 0x2b6   : > { %v1056_v52 = vpop.f32.mrb[31].mxu0  ;;  %v2483_v55 = vadd.f32 %v1884_v50, %v2420_v23 }
 0x2b7   : > { %v2478_v53 = vadd.f32 %v2420_v23, %v1056_v52 }
 0x2b8   : > { %1171 = vmax.xlane.f32.xlu1 %v2475_v51 }
 0x2b9   : > { %v1887_v54 = vpop.f32.mrb[32].mxu0  ;;  %1173 = vmax.xlane.f32.xlu0 %v2478_v53 }
 0x2ba   : > { %v1066_v56 = vpop.f32.mrb[33].mxu0  ;;  %v2491_v59 = vadd.f32 %v1887_v54, %v2420_v23 }
 0x2bb   : > { %v2486_v57 = vadd.f32 %v2420_v23, %v1066_v56 }
 0x2bc   : > { %1175 = vmax.xlane.f32.xlu1 %v2483_v55 }
 0x2bd   : > { %v1890_v58 = vpop.f32.mrb[34].mxu0  ;;  %1177 = vmax.xlane.f32.xlu0 %v2486_v57 }
 0x2be   : > { %v1076_v60 = vpop.f32.mrb[35].mxu0  ;;  %v2499_v63 = vadd.f32 %v1890_v58, %v2420_v23 }
 0x2bf   : > { %v2494_v61 = vadd.f32 %v2420_v23, %v1076_v60 }
 0x2c0   : > { %1179 = vmax.xlane.f32.xlu1 %v2491_v59 }
 0x2c1   : > { %v1893_v62 = vpop.f32.mrb[36].mxu0  ;;  %1181 = vmax.xlane.f32.xlu0 %v2494_v61 }
 0x2c2   : > { %v1086_v0 = vpop.f32.mrb[37].mxu0  ;;  %v2507_v3 = vadd.f32 %v1893_v62, %v2420_v23 }
 0x2c3   : > { %v2502_v1 = vadd.f32 %v2420_v23, %v1086_v0 }
 0x2c4   : > { %1183 = vmax.xlane.f32.xlu1 %v2499_v63 }
 0x2c5   : > { %v1896_v2 = vpop.f32.mrb[38].mxu0  ;;  %1185 = vmax.xlane.f32.xlu0 %v2502_v1 }
 0x2c6   : > { %v1096_v4 = vpop.f32.mrb[39].mxu0  ;;  %v2515_v7 = vadd.f32 %v1896_v2, %v2420_v23 }
 0x2c7   : > { %v2510_v5 = vadd.f32 %v2420_v23, %v1096_v4 }
 0x2c8   : > { %1187 = vmax.xlane.f32.xlu1 %v2507_v3 }
 0x2c9   : > { %v1899_v6 = vpop.f32.mrb[40].mxu0  ;;  %1189 = vmax.xlane.f32.xlu0 %v2510_v5 }
 0x2ca   : > { %v1106_v8 = vpop.f32.mrb[41].mxu0  ;;  %v2523_v11 = vadd.f32 %v1899_v6, %v2420_v23 }
 0x2cb   : > { %v2518_v9 = vadd.f32 %v2420_v23, %v1106_v8 }
 0x2cc   : > { %1191 = vmax.xlane.f32.xlu1 %v2515_v7 }
 0x2cd   : > { %v1902_v10 = vpop.f32.mrb[42].mxu0  ;;  %1193 = vmax.xlane.f32.xlu0 %v2518_v9 }
 0x2ce   : > { %v1116_v12 = vpop.f32.mrb[43].mxu0  ;;  %v2531_v15 = vadd.f32 %v1902_v10, %v2420_v23 }
 0x2cf   : > { %v2526_v13 = vadd.f32 %v2420_v23, %v1116_v12 }
 0x2d0   : > { %1195 = vmax.xlane.f32.xlu1 %v2523_v11 }
 0x2d1   : > { %v1905_v14 = vpop.f32.mrb[44].mxu0  ;;  %1197 = vmax.xlane.f32.xlu0 %v2526_v13 }
 0x2d2   : > { %v1126_v17 = vpop.f32.mrb[45].mxu0  ;;  %v2539_v20 = vadd.f32 %v1905_v14, %v2420_v23 }
 0x2d3   : > { %v2534_v18 = vadd.f32 %v2420_v23, %v1126_v17 }
 0x2d4   : > { %1199 = vmax.xlane.f32.xlu1 %v2531_v15 }
 0x2d5   : > { %v1908_v19 = vpop.f32.mrb[46].mxu0  ;;  %1201 = vmax.xlane.f32.xlu0 %v2534_v18 }
 0x2d6   : > { %v2542_v21 = vadd.f32 %v1908_v19, %v2420_v23  ;;  %v1136_v22 = vpop.f32.mrb[47].mxu0 }
 0x2d7   : > { %v2545_v24 = vadd.f32 %v2420_v23, %v1136_v22 }
 0x2d8   : > { %1203 = vmax.xlane.f32.xlu1 %v2539_v20 }
 0x2d9   : > { %1205 = vmax.xlane.f32.xlu0 %v2545_v24 }
 0x2dc   : > { %1207 = vmax.xlane.f32.xlu1 %v2542_v21 }
 0x329   : > { %v1148_v27 = vpop.xlane.xlu0 %1147 }
 0x32a   : > { %v1210_v26 = vsub.f32 %v2423_v25, %v1148_v27 }
 0x32c   : > { %v1243_v29 = vmul.f32 1.442695, %v1210_v26 }
 0x32d   : > { %v1152_v30 = vpop.xlane.xlu1 %1151  ;;  %v1146_v32 = vpop.xlane.xlu0 %1145 }
 0x32e   : > { %1987 = vpow2.f32 %v1243_v29  ;;  %v1212_v34 = vsub.f32 %v2430_v28, %v1152_v30  ;;  %v1209_v36 = vsub.f32 %v2427_v16, %v1146_v32 }
 0x330   : > { %v1247_v38 = vmul.f32 1.442695, %v1212_v34  ;;  %v1241_v23 = vmul.f32 1.442695, %v1209_v36 }
 0x331   : > { %v1150_v40 = vpop.xlane.xlu1 %1149 }
 0x332   : > { %1989 = vpow2.f32 %v1247_v38  ;;  %v1211_v42 = vsub.f32 %v2435_v31, %v1150_v40  ;;  %v1154_v44 = vpop.xlane.xlu0 %1153 }
 0x333   : > { %1991 = vpow2.f32 %v1241_v23  ;;  %v1213_v46 = vsub.f32 %v2438_v33, %v1154_v44 }
 0x334   : > { %v1245_v48 = vmul.f32 1.442695, %v1211_v42 }
 0x335   : > { %v1156_v25 = vpop.xlane.xlu1 %1155  ;;  %v1249_v54 = vmul.f32 1.442695, %v1213_v46 }
 0x336   : > { %1993 = vpow2.f32 %v1245_v48  ;;  %v1214_v50 = vsub.f32 %v2443_v35, %v1156_v25  ;;  %v1158_v52 = vpop.xlane.xlu0 %1157 }
 0x337   : > { %v1215_v28 = vsub.f32 %v2446_v37, %v1158_v52 }
 0x338   : > { %v2557_v16 = vpop.eup %1987  ;;  %v1251_v56 = vmul.f32 1.442695, %v1214_v50 }
 0x339   : > { %1307 = vadd.xlane.f32.xlu1 %v2557_v16  ;;  %v1160_v58 = vpop.xlane.xlu1 %1159  ;;  %v1253_v33 = vmul.f32 1.442695, %v1215_v28 }
 0x33a   : > { %1995 = vpow2.f32 %v1251_v56  ;;  %v1216_v31 = vsub.f32 %v2451_v39, %v1160_v58  ;;  %v1162_v60 = vpop.xlane.xlu0 %1161 }
 0x33b   : > { %1997 = vpow2.f32 %v1249_v54  ;;  %v1217_v62 = vsub.f32 %v2454_v41, %v1162_v60 }
 0x33c   : > { %v2562_v0 = vpop.eup %1989  ;;  %v1255_v35 = vmul.f32 1.442695, %v1216_v31 }
 0x33d   : > { %v2564_v2 = vpop.eup %1991  ;;  %1311 = vadd.xlane.f32.xlu1 %v2562_v0  ;;  %v1164_v37 = vpop.xlane.xlu1 %1163  ;;  %v1257_v39 = vmul.f32 1.442695, %v1217_v62 }
 0x33e   : > { %1999 = vpow2.f32 %v1255_v35  ;;  %v1218_v4 = vsub.f32 %v2459_v43, %v1164_v37  ;;  %1305 = vadd.xlane.f32.xlu0 %v2564_v2  ;;  %v1166_v6 = vpop.xlane.xlu0 %1165 }
 0x33f   : > { %2001 = vpow2.f32 %v1253_v33  ;;  %v1219_v8 = vsub.f32 %v2462_v45, %v1166_v6 }
 0x340   : > { %v2570_v10 = vpop.eup %1993  ;;  %v1259_v41 = vmul.f32 1.442695, %v1218_v4 }
 0x341   : > { %v1168_v12 = vpop.xlane.xlu1 %1167  ;;  %v1261_v19 = vmul.f32 1.442695, %v1219_v8 }
 0x342   : > { %2003 = vpow2.f32 %v1259_v41  ;;  %v1220_v14 = vsub.f32 %v2467_v47, %v1168_v12  ;;  %1309 = vadd.xlane.f32.xlu0 %v2570_v10  ;;  %v1170_v17 = vpop.xlane.xlu0 %1169 }
 0x343   : > { %2005 = vpow2.f32 %v1257_v39  ;;  %v1221_v43 = vsub.f32 %v2470_v49, %v1170_v17 }
 0x344   : > { %v2575_v22 = vpop.eup %1995  ;;  %v1263_v27 = vmul.f32 1.442695, %v1220_v14 }
 0x345   : > { %v2577_v26 = vpop.eup %1997  ;;  %1315 = vadd.xlane.f32.xlu1 %v2575_v22  ;;  %v1172_v45 = vpop.xlane.xlu1 %1171  ;;  %v1265_v30 = vmul.f32 1.442695, %v1221_v43 }
 0x346   : > { %2007 = vpow2.f32 %v1263_v27  ;;  %v1222_v29 = vsub.f32 %v2475_v51, %v1172_v45  ;;  %1313 = vadd.xlane.f32.xlu0 %v2577_v26  ;;  %v1174_v47 = vpop.xlane.xlu0 %1173 }
 0x347   : > { %2009 = vpow2.f32 %v1261_v19  ;;  %v1223_v32 = vsub.f32 %v2478_v53, %v1174_v47 }
 0x348   : > { %v2583_v34 = vpop.eup %1999  ;;  %v1267_v49 = vmul.f32 1.442695, %v1222_v29 }
 0x349   : > { %v2585_v36 = vpop.eup %2001  ;;  %1319 = vadd.xlane.f32.xlu1 %v2583_v34  ;;  %v1176_v38 = vpop.xlane.xlu1 %1175  ;;  %v1269_v40 = vmul.f32 1.442695, %v1223_v32 }
 0x34a   : > { %2011 = vpow2.f32 %v1267_v49  ;;  %v1224_v23 = vsub.f32 %v2483_v55, %v1176_v38  ;;  %1317 = vadd.xlane.f32.xlu0 %v2585_v36  ;;  %v1178_v51 = vpop.xlane.xlu0 %1177 }
 0x34b   : > { %2013 = vpow2.f32 %v1265_v30  ;;  %v1225_v42 = vsub.f32 %v2486_v57, %v1178_v51 }
 0x34c   : > { %v2591_v44 = vpop.eup %2003  ;;  %v1271_v53 = vmul.f32 1.442695, %v1224_v23 }
 0x34d   : > { %v2593_v46 = vpop.eup %2005  ;;  %1323 = vadd.xlane.f32.xlu1 %v2591_v44  ;;  %v1180_v48 = vpop.xlane.xlu1 %1179  ;;  %v1273_v50 = vmul.f32 1.442695, %v1225_v42 }
 0x34e   : > { %2015 = vpow2.f32 %v1271_v53  ;;  %v1226_v25 = vsub.f32 %v2491_v59, %v1180_v48  ;;  %1321 = vadd.xlane.f32.xlu0 %v2593_v46  ;;  %v1182_v55 = vpop.xlane.xlu0 %1181 }
 0x34f   : > { %2017 = vpow2.f32 %v1269_v40  ;;  %v1227_v52 = vsub.f32 %v2494_v61, %v1182_v55 }
 0x350   : > { %v2599_v54 = vpop.eup %2007  ;;  %v1275_v57 = vmul.f32 1.442695, %v1226_v25 }
 0x351   : > { %v2601_v28 = vpop.eup %2009  ;;  %1327 = vadd.xlane.f32.xlu1 %v2599_v54  ;;  %v1184_v56 = vpop.xlane.xlu1 %1183  ;;  %v1277_v31 = vmul.f32 1.442695, %v1227_v52 }
 0x352   : > { %2019 = vpow2.f32 %v1275_v57  ;;  %v1228_v58 = vsub.f32 %v2499_v63, %v1184_v56  ;;  %1325 = vadd.xlane.f32.xlu0 %v2601_v28  ;;  %v1186_v59 = vpop.xlane.xlu0 %1185 }
 0x353   : > { %2021 = vpow2.f32 %v1273_v50  ;;  %v1229_v60 = vsub.f32 %v2502_v1, %v1186_v59 }
 0x354   : > { %v2607_v33 = vpop.eup %2011  ;;  %v1279_v61 = vmul.f32 1.442695, %v1228_v58 }
 0x355   : > { %v2609_v62 = vpop.eup %2013  ;;  %1331 = vadd.xlane.f32.xlu1 %v2607_v33  ;;  %v1188_v35 = vpop.xlane.xlu1 %1187  ;;  %v1281_v4 = vmul.f32 1.442695, %v1229_v60 }
 0x356   : > { %2023 = vpow2.f32 %v1279_v61  ;;  %v1230_v37 = vsub.f32 %v2507_v3, %v1188_v35  ;;  %1329 = vadd.xlane.f32.xlu0 %v2609_v62  ;;  %v1190_v63 = vpop.xlane.xlu0 %1189 }
 0x357   : > { %2025 = vpow2.f32 %v1277_v31  ;;  %v1231_v6 = vsub.f32 %v2510_v5, %v1190_v63 }
 0x358   : > { %v2615_v39 = vpop.eup %2015  ;;  %v1283_v1 = vmul.f32 1.442695, %v1230_v37 }
 0x359   : > { %v2617_v8 = vpop.eup %2017  ;;  %1335 = vadd.xlane.f32.xlu1 %v2615_v39  ;;  %v1192_v41 = vpop.xlane.xlu1 %1191  ;;  %v1285_v14 = vmul.f32 1.442695, %v1231_v6 }
 0x35a   : > { %2027 = vpow2.f32 %v1283_v1  ;;  %v1232_v12 = vsub.f32 %v2515_v7, %v1192_v41  ;;  %1333 = vadd.xlane.f32.xlu0 %v2617_v8  ;;  %v1194_v3 = vpop.xlane.xlu0 %1193 }
 0x35b   : > { %2029 = vpow2.f32 %v1281_v4  ;;  %v1233_v17 = vsub.f32 %v2518_v9, %v1194_v3 }
 0x35c   : > { %v2623_v19 = vpop.eup %2019  ;;  %v1287_v5 = vmul.f32 1.442695, %v1232_v12 }
 0x35d   : > { %v2625_v43 = vpop.eup %2021  ;;  %1339 = vadd.xlane.f32.xlu1 %v2623_v19  ;;  %v1196_v27 = vpop.xlane.xlu1 %1195  ;;  %v1289_v29 = vmul.f32 1.442695, %v1233_v17 }
 0x35e   : > { %2031 = vpow2.f32 %v1287_v5  ;;  %v1234_v45 = vsub.f32 %v2523_v11, %v1196_v27  ;;  %1337 = vadd.xlane.f32.xlu0 %v2625_v43  ;;  %v1198_v7 = vpop.xlane.xlu0 %1197 }
 0x35f   : > { %2033 = vpow2.f32 %v1285_v14  ;;  %v1235_v47 = vsub.f32 %v2526_v13, %v1198_v7 }
 0x360   : > { %v2631_v30 = vpop.eup %2023  ;;  %v1291_v9 = vmul.f32 1.442695, %v1234_v45 }
 0x361   : > { %v2633_v32 = vpop.eup %2025  ;;  %1343 = vadd.xlane.f32.xlu1 %v2631_v30  ;;  %v1200_v49 = vpop.xlane.xlu1 %1199  ;;  %v1293_v23 = vmul.f32 1.442695, %v1235_v47 }
 0x362   : > { %2035 = vpow2.f32 %v1291_v9  ;;  %v1236_v38 = vsub.f32 %v2531_v15, %v1200_v49  ;;  %1341 = vadd.xlane.f32.xlu0 %v2633_v32  ;;  %v1202_v11 = vpop.xlane.xlu0 %1201 }
 0x363   : > { %2037 = vpow2.f32 %v1289_v29  ;;  %v1237_v51 = vsub.f32 %v2534_v18, %v1202_v11 }
 0x364   : > { %v2639_v40 = vpop.eup %2027  ;;  %v1295_v13 = vmul.f32 1.442695, %v1236_v38 }
 0x365   : > { %v2641_v42 = vpop.eup %2029  ;;  %1347 = vadd.xlane.f32.xlu1 %v2639_v40  ;;  %v1204_v53 = vpop.xlane.xlu1 %1203  ;;  %v1297_v25 = vmul.f32 1.442695, %v1237_v51 }
 0x366   : > { %2039 = vpow2.f32 %v1295_v13  ;;  %v1238_v48 = vsub.f32 %v2539_v20, %v1204_v53  ;;  %1345 = vadd.xlane.f32.xlu0 %v2641_v42  ;;  %v1206_v15 = vpop.xlane.xlu0 %1205 }
 0x367   : > { %2041 = vpow2.f32 %v1293_v23  ;;  %v1239_v55 = vsub.f32 %v2545_v24, %v1206_v15 }
 0x368   : > { %v2647_v50 = vpop.eup %2031  ;;  %v1299_v18 = vmul.f32 1.442695, %v1238_v48 }
 0x369   : > { %v2649_v52 = vpop.eup %2033  ;;  %1351 = vadd.xlane.f32.xlu1 %v2647_v50  ;;  %v1208_v57 = vpop.xlane.xlu1 %1207  ;;  %v1301_v20 = vmul.f32 1.442695, %v1239_v55 }
 0x36a   : > { %2043 = vpow2.f32 %v1299_v18  ;;  %v1240_v56 = vsub.f32 %v2542_v21, %v1208_v57  ;;  %1349 = vadd.xlane.f32.xlu0 %v2649_v52 }
 0x36b   : > { %2045 = vpow2.f32 %v1297_v25 }
 0x36c   : > { %v2654_v58 = vpop.eup %2035  ;;  %v1303_v59 = vmul.f32 1.442695, %v1240_v56 }
 0x36d   : > { %v2656_v31 = vpop.eup %2037  ;;  %1355 = vadd.xlane.f32.xlu1 %v2654_v58 }
 0x36e   : > { %2047 = vpow2.f32 %v1303_v59  ;;  %1353 = vadd.xlane.f32.xlu0 %v2656_v31 }
 0x36f   : > { %2049 = vpow2.f32 %v1301_v20 }
 0x370   : > { %v2660_v24 = vpop.eup %2039 }
 0x371   : > { %v2662_v60 = vpop.eup %2041  ;;  %1359 = vadd.xlane.f32.xlu1 %v2660_v24 }
 0x372   : > { %1357 = vadd.xlane.f32.xlu0 %v2662_v60 }
 0x374   : > { %v2666_v21 = vpop.eup %2043 }
 0x375   : > { %v2668_v61 = vpop.eup %2045  ;;  %1363 = vadd.xlane.f32.xlu1 %v2666_v21 }
 0x376   : > { %1361 = vadd.xlane.f32.xlu0 %v2668_v61 }
 0x378   : > { %v2672_v35 = vpop.eup %2047 }
 0x379   : > { %v2674_v37 = vpop.eup %2049  ;;  %1367 = vadd.xlane.f32.xlu1 %v2672_v35 }
 0x37a   : > { %1365 = vadd.xlane.f32.xlu0 %v2674_v37 }
 0x3c6   : > { %v1308_v63 = vpop.xlane.xlu1 %1307 }
 0x3c7   : > { %2051 = vrcp.f32 %v1308_v63 }
 0x3ca   : > { %v1312_v4 = vpop.xlane.xlu1 %1311 }
 0x3cb   : > { %2053 = vrcp.f32 %v1312_v4  ;;  %v1306_v6 = vpop.xlane.xlu0 %1305 }
 0x3cc   : > { %2055 = vrcp.f32 %v1306_v6 }
 0x3cf   : > { %v1310_v1 = vpop.xlane.xlu0 %1309 }
 0x3d0   : > { %2057 = vrcp.f32 %v1310_v1 }
 0x3d1   : > { %v2052_v41 = vpop.eup %2051 }
 0x3d2   : > { %v1402_v12 = vmul.f32 %v2052_v41, %v2557_v16  ;;  %v1316_v3 = vpop.xlane.xlu1 %1315 }
 0x3d3   : > { %2059 = vrcp.f32 %v1316_v3  ;;  %v1314_v14 = vpop.xlane.xlu0 %1313 }
 0x3d4   : > { %1434 = vst [vmem:[%s2683_s11 + $0x8] sm:$0xff] %v1402_v12  ;;  %2061 = vrcp.f32 %v1314_v14 }
 0x3d5   : > { %v2054_v17 = vpop.eup %2053 }
 0x3d6   : > { %v2056_v5 = vpop.eup %2055  ;;  %v1404_v27 = vmul.f32 %v2054_v17, %v2562_v0  ;;  %v1320_v45 = vpop.xlane.xlu1 %1319 }
 0x3d7   : > { %v1401_v7 = vmul.f32 %v2056_v5, %v2564_v2  ;;  %2063 = vrcp.f32 %v1320_v45  ;;  %v1318_v29 = vpop.xlane.xlu0 %1317 }
 0x3d8   : > { %1436 = vst [vmem:[%s2683_s11 + $0x18] sm:$0xff] %v1404_v27  ;;  %2065 = vrcp.f32 %v1318_v29 }
 0x3d9   : > { %1433 = vst [vmem:[%s2683_s11] sm:$0xff] %v1401_v7 }
 0x3da   : > { %v2058_v16 = vpop.eup %2057  ;;  %v1324_v47 = vpop.xlane.xlu1 %1323 }
 0x3db   : > { %v1403_v9 = vmul.f32 %v2058_v16, %v2570_v10  ;;  %2067 = vrcp.f32 %v1324_v47  ;;  %v1322_v49 = vpop.xlane.xlu0 %1321 }
 0x3dc   : > { %2069 = vrcp.f32 %v1322_v49 }
 0x3dd   : > { %v2060_v38 = vpop.eup %2059  ;;  %1435 = vst [vmem:[%s2683_s11 + $0x10] sm:$0xff] %v1403_v9 }
 0x3de   : > { %v2062_v0 = vpop.eup %2061  ;;  %v1406_v2 = vmul.f32 %v2060_v38, %v2575_v22  ;;  %v1328_v11 = vpop.xlane.xlu1 %1327 }
 0x3df   : > { %v1405_v23 = vmul.f32 %v2062_v0, %v2577_v26  ;;  %2071 = vrcp.f32 %v1328_v11  ;;  %v1326_v51 = vpop.xlane.xlu0 %1325 }
 0x3e0   : > { %1438 = vst [vmem:[%s2683_s11 + $0x28] sm:$0xff] %v1406_v2  ;;  %2073 = vrcp.f32 %v1326_v51 }
 0x3e1   : > { %v2064_v13 = vpop.eup %2063  ;;  %1437 = vst [vmem:[%s2683_s11 + $0x20] sm:$0xff] %v1405_v23 }
 0x3e2   : > { %v2066_v10 = vpop.eup %2065  ;;  %v1408_v53 = vmul.f32 %v2064_v13, %v2583_v34  ;;  %v1332_v48 = vpop.xlane.xlu1 %1331 }
 0x3e3   : > { %v1407_v15 = vmul.f32 %v2066_v10, %v2585_v36  ;;  %2075 = vrcp.f32 %v1332_v48  ;;  %v1330_v22 = vpop.xlane.xlu0 %1329 }
 0x3e4   : > { %1440 = vst [vmem:[%s2683_s11 + $0x38] sm:$0xff] %v1408_v53  ;;  %2077 = vrcp.f32 %v1330_v22 }
 0x3e5   : > { %v2068_v26 = vpop.eup %2067  ;;  %1439 = vst [vmem:[%s2683_s11 + $0x30] sm:$0xff] %v1407_v15 }
 0x3e6   : > { %v2070_v25 = vpop.eup %2069  ;;  %v1410_v55 = vmul.f32 %v2068_v26, %v2591_v44  ;;  %v1336_v18 = vpop.xlane.xlu1 %1335 }
 0x3e7   : > { %v1409_v57 = vmul.f32 %v2070_v25, %v2593_v46  ;;  %2079 = vrcp.f32 %v1336_v18  ;;  %v1334_v34 = vpop.xlane.xlu0 %1333 }
 0x3e8   : > { %1442 = vst [vmem:[%s2683_s11 + $0x48] sm:$0xff] %v1410_v55  ;;  %2081 = vrcp.f32 %v1334_v34 }
 0x3e9   : > { %v2072_v36 = vpop.eup %2071  ;;  %1441 = vst [vmem:[%s2683_s11 + $0x40] sm:$0xff] %v1409_v57 }
 0x3ea   : > { %v2074_v56 = vpop.eup %2073  ;;  %v1412_v20 = vmul.f32 %v2072_v36, %v2599_v54  ;;  %v1340_v59 = vpop.xlane.xlu1 %1339 }
 0x3eb   : > { %v1411_v63 = vmul.f32 %v2074_v56, %v2601_v28  ;;  %2083 = vrcp.f32 %v1340_v59  ;;  %v1338_v44 = vpop.xlane.xlu0 %1337 }
 0x3ec   : > { %1444 = vst [vmem:[%s2683_s11 + $0x58] sm:$0xff] %v1412_v20  ;;  %2085 = vrcp.f32 %v1338_v44 }
 0x3ed   : > { %v2076_v46 = vpop.eup %2075  ;;  %1443 = vst [vmem:[%s2683_s11 + $0x50] sm:$0xff] %v1411_v63 }
 0x3ee   : > { %v2078_v4 = vpop.eup %2077  ;;  %v1414_v6 = vmul.f32 %v2076_v46, %v2607_v33  ;;  %v1344_v1 = vpop.xlane.xlu1 %1343 }
 0x3ef   : > { %v1413_v41 = vmul.f32 %v2078_v4, %v2609_v62  ;;  %2087 = vrcp.f32 %v1344_v1  ;;  %v1342_v54 = vpop.xlane.xlu0 %1341 }
 0x3f0   : > { %1446 = vst [vmem:[%s2683_s11 + $0x68] sm:$0xff] %v1414_v6  ;;  %2089 = vrcp.f32 %v1342_v54 }
 0x3f1   : > { %v2080_v28 = vpop.eup %2079  ;;  %1445 = vst [vmem:[%s2683_s11 + $0x60] sm:$0xff] %v1413_v41 }
 0x3f2   : > { %v2082_v12 = vpop.eup %2081  ;;  %v1416_v3 = vmul.f32 %v2080_v28, %v2615_v39  ;;  %v1348_v14 = vpop.xlane.xlu1 %1347 }
 0x3f3   : > { %v1415_v17 = vmul.f32 %v2082_v12, %v2617_v8  ;;  %2091 = vrcp.f32 %v1348_v14  ;;  %v1346_v33 = vpop.xlane.xlu0 %1345 }
 0x3f4   : > { %1448 = vst [vmem:[%s2683_s11 + $0x78] sm:$0xff] %v1416_v3  ;;  %2093 = vrcp.f32 %v1346_v33 }
 0x3f5   : > { %v2084_v62 = vpop.eup %2083  ;;  %1447 = vst [vmem:[%s2683_s11 + $0x70] sm:$0xff] %v1415_v17 }
 0x3f6   : > { %v2086_v5 = vpop.eup %2085  ;;  %v1418_v27 = vmul.f32 %v2084_v62, %v2623_v19  ;;  %v1352_v45 = vpop.xlane.xlu1 %1351 }
 0x3f7   : > { %v1417_v7 = vmul.f32 %v2086_v5, %v2625_v43  ;;  %2095 = vrcp.f32 %v1352_v45  ;;  %v1350_v39 = vpop.xlane.xlu0 %1349 }
 0x3f8   : > { %1450 = vst [vmem:[%s2683_s11 + $0x88] sm:$0xff] %v1418_v27  ;;  %2097 = vrcp.f32 %v1350_v39 }
 0x3f9   : > { %v2088_v8 = vpop.eup %2087  ;;  %1449 = vst [vmem:[%s2683_s11 + $0x80] sm:$0xff] %v1417_v7 }
 0x3fa   : > { %v2090_v29 = vpop.eup %2089  ;;  %v1420_v16 = vmul.f32 %v2088_v8, %v2631_v30  ;;  %v1356_v47 = vpop.xlane.xlu1 %1355 }
 0x3fb   : > { %v1419_v9 = vmul.f32 %v2090_v29, %v2633_v32  ;;  %2099 = vrcp.f32 %v1356_v47  ;;  %v1354_v19 = vpop.xlane.xlu0 %1353 }
 0x3fc   : > { %1452 = vst [vmem:[%s2683_s11 + $0x98] sm:$0xff] %v1420_v16  ;;  %2101 = vrcp.f32 %v1354_v19 }
 0x3fd   : > { %v2092_v43 = vpop.eup %2091  ;;  %1451 = vst [vmem:[%s2683_s11 + $0x90] sm:$0xff] %v1419_v9 }
 0x3fe   : > { %v2094_v49 = vpop.eup %2093  ;;  %v1422_v38 = vmul.f32 %v2092_v43, %v2639_v40  ;;  %v1360_v0 = vpop.xlane.xlu1 %1359 }
 0x3ff   : > { %v1421_v2 = vmul.f32 %v2094_v49, %v2641_v42  ;;  %2103 = vrcp.f32 %v1360_v0  ;;  %v1358_v30 = vpop.xlane.xlu0 %1357 }
 0x400   : > { %1454 = vst [vmem:[%s2683_s11 + $0xa8] sm:$0xff] %v1422_v38  ;;  %2105 = vrcp.f32 %v1358_v30 }
 0x401   : > { %v2096_v32 = vpop.eup %2095  ;;  %1453 = vst [vmem:[%s2683_s11 + $0xa0] sm:$0xff] %v1421_v2 }
 0x402   : > { %v2098_v11 = vpop.eup %2097  ;;  %v1424_v23 = vmul.f32 %v2096_v32, %v2647_v50  ;;  %v1364_v51 = vpop.xlane.xlu1 %1363 }
 0x403   : > { %v1423_v13 = vmul.f32 %v2098_v11, %v2649_v52  ;;  %2107 = vrcp.f32 %v1364_v51  ;;  %v1362_v40 = vpop.xlane.xlu0 %1361 }
 0x404   : > { %1456 = vst [vmem:[%s2683_s11 + $0xb8] sm:$0xff] %v1424_v23  ;;  %2109 = vrcp.f32 %v1362_v40 }
 0x405   : > { %v2100_v42 = vpop.eup %2099  ;;  %1455 = vst [vmem:[%s2683_s11 + $0xb0] sm:$0xff] %v1423_v13 }
 0x406   : > { %v2102_v10 = vpop.eup %2101  ;;  %v1426_v53 = vmul.f32 %v2100_v42, %v2654_v58  ;;  %v1368_v48 = vpop.xlane.xlu1 %1367 }
 0x407   : > { %v1425_v15 = vmul.f32 %v2102_v10, %v2656_v31  ;;  %2111 = vrcp.f32 %v1368_v48  ;;  %v1366_v50 = vpop.xlane.xlu0 %1365 }
 0x408   : > { %1458 = vst [vmem:[%s2683_s11 + $0xc8] sm:$0xff] %v1426_v53  ;;  %2113 = vrcp.f32 %v1366_v50 }
 0x409   : > { %v2104_v52 = vpop.eup %2103  ;;  %1457 = vst [vmem:[%s2683_s11 + $0xc0] sm:$0xff] %v1425_v15 }
 0x40a   : > { %v2106_v22 = vpop.eup %2105  ;;  %v1428_v26 = vmul.f32 %v2104_v52, %v2660_v24 }
 0x40b   : > { %v1427_v25 = vmul.f32 %v2106_v22, %v2662_v60 }
 0x40c   : > { %1460 = vst [vmem:[%s2683_s11 + $0xd8] sm:$0xff] %v1428_v26 }
 0x40d   : > { %v2108_v58 = vpop.eup %2107  ;;  %1459 = vst [vmem:[%s2683_s11 + $0xd0] sm:$0xff] %v1427_v25 }
 0x40e   : > { %v2110_v55 = vpop.eup %2109  ;;  %v1430_v31 = vmul.f32 %v2108_v58, %v2666_v21 }
 0x40f   : > { %v1429_v18 = vmul.f32 %v2110_v55, %v2668_v61 }
 0x410   : > { %1462 = vst [vmem:[%s2683_s11 + $0xe8] sm:$0xff] %v1430_v31 }
 0x411   : > { %v2112_v57 = vpop.eup %2111  ;;  %1461 = vst [vmem:[%s2683_s11 + $0xe0] sm:$0xff] %v1429_v18 }
 0x412   : > { %v2114_v34 = vpop.eup %2113  ;;  %v1432_v36 = vmul.f32 %v2112_v57, %v2672_v35 }
 0x413   : > { %v1431_v56 = vmul.f32 %v2114_v34, %v2674_v37 }
 0x414   : > { %1464 = vst [vmem:[%s2683_s11 + $0xf8] sm:$0xff] %v1432_v36 }
 0x415   : > { %1463 = vst [vmem:[%s2683_s11 + $0xf0] sm:$0xff] %v1431_v56 }
 0x416 PF: > { %s15_s18 = sadd.s32 1, %s2121_s18  }
 0x417   : > { %p12_p4 = scmp.ge.s32.totalorder %s15_s18, 6  }
 0x419   :  { %14 = sbr.rel (!%p12_p4) target bundleno = 1 (0x1), region = 70 }

</bundles_post_ra>
